<compile_context>
chip_gen: v7x
topology: tpu7x:2x2x1
jax: 0.10.0
libtpu: 0.0.40
codegen_flags: <defaults>
</compile_context>

<pallas_src>
import math

import jax
import jax.numpy as jnp
from jax.experimental import pallas as pl
from jax.experimental.pallas import tpu as pltpu


def _patch_encoder_kernel(x_ref, w_ref, pb_ref, o_ref):
    # x_ref:  (TM, K)  row tile of flattened patches (TM rows of B*N)
    # w_ref:  (D, K)   projection weight in torch Linear layout (grid-invariant)
    # pb_ref: (N, D)   position embedding + bias (grid-invariant)
    # o_ref:  (TM, D)
    proj = jax.lax.dot_general(
        x_ref[...], w_ref[...],
        dimension_numbers=(((1,), (1,)), ((), ())),   # x @ W^T, no transpose op
        preferred_element_type=jnp.float32)           # f32 accumulation on MXU
    reps = o_ref.shape[0] // pb_ref.shape[0]          # static: tm // N
    pb = pb_ref[...].astype(jnp.float32)
    pb_full = pb if reps == 1 else jnp.tile(pb, (reps, 1))
    o_ref[...] = (proj + pb_full).astype(o_ref.dtype)


def _sublane_min(dtype):
    # f32 -> 8, bf16 -> 16, int8/fp8 -> 32 sublane granularity.
    return max(8, 32 // jnp.dtype(dtype).itemsize)


def _vmem_capacity_bytes():
    try:
        return int(pltpu.get_tpu_info().vmem_capacity_bytes)
    except Exception:
        return 64 * 1024 * 1024   # conservative: v7x per-TC VMEM


def patch_encoder(patch, weight, bias, pos_emb, *,
                  row_tile_cap=32768, min_pallas_rows=4096, force_pallas=False):
    """patch: [B, N, K], weight: [D, K] (torch Linear layout), bias: [D],
    pos_emb: [1, N, D]  ->  [B, N, D]  (== Linear(patch) + position_embedding)"""
    B, N, K = patch.shape
    D = weight.shape[0]
    M = B * N

    # Tiny problems: a single fused XLA op beats kernel dispatch + one grid step.
    if M < min_pallas_rows and not force_pallas:
        proj = jnp.einsum("bnk,dk->bnd", patch, weight)
        return (proj + bias.reshape(1, 1, D) + pos_emb).astype(patch.dtype)

    # Fold bias into the position embedding once (exact in f32).
    pos_bias = (pos_emb.reshape(N, D) + bias.reshape(1, D)).astype(patch.dtype)

    x2d = patch.reshape(M, K)                    # layout-identical row view
    itemsize = jnp.dtype(patch.dtype).itemsize

    # Row tile: a multiple of lcm(sublane_min(dtype), N) so the sublane layout
    # constraint holds and every tile starts at a patch boundary.  Size comes
    # from a per-generation VMEM budget: x block lane-padded K->128 and the out
    # block lane-padded D->128, both double-buffered.
    sub = _sublane_min(patch.dtype)
    unit = sub * N // math.gcd(sub, N)
    lane = 128
    bytes_per_row = itemsize * 2 * (pl.cdiv(K, lane) * lane + pl.cdiv(D, lane) * lane)
    fixed_bytes = 1 << 20                        # weight + pos tiles + slack
    vmem_cap = _vmem_capacity_bytes()
    tm_budget = max(unit, (vmem_cap // 2 - fixed_bytes) // bytes_per_row)
    tm_cap = min(row_tile_cap, tm_budget)
    if M <= tm_cap:
        tm = M                                   # single block == full extent
    else:
        tm = max(unit, (tm_cap // unit) * unit)
    grid_m = pl.cdiv(M, tm)

    vmem_needed = tm * bytes_per_row + fixed_bytes + (8 << 20)
    vmem_limit = int(min(vmem_cap, max(32 << 20, vmem_needed)))

    out2d = pl.pallas_call(
        _patch_encoder_kernel,
        out_shape=jax.ShapeDtypeStruct((M, D), patch.dtype),
        grid_spec=pltpu.PrefetchScalarGridSpec(
            num_scalar_prefetch=0,
            grid=(grid_m,),
            in_specs=[
                # row tile of patches (pipelined / double-buffered by default)
                pl.BlockSpec((tm, K), lambda i: (i, 0)),
                # grid-invariant operands: load once, single-buffered
                pl.BlockSpec((D, K), lambda i: (0, 0),
                             pipeline_mode=pl.Buffered(buffer_count=1)),
                pl.BlockSpec((N, D), lambda i: (0, 0),
                             pipeline_mode=pl.Buffered(buffer_count=1)),
            ],
            out_specs=pl.BlockSpec((tm, D), lambda i: (i, 0)),
        ),
        compiler_params=pltpu.CompilerParams(
            # Independent row tiles -> megacore/TC sharding where available
            # (v7x); harmless serial loop on single-TC v5e/v6e.
            dimension_semantics=("parallel",),
            vmem_limit_bytes=vmem_limit),
        cost_estimate=pl.CostEstimate(
            flops=2 * M * K * D,
            bytes_accessed=itemsize * (M * K + M * D) + 4 * (D * K + N * D),
            transcendentals=0),
    )(x2d, weight, pos_bias)

    return out2d.reshape(B, N, D)


if __name__ == "__main__":
    # Small shapes consistent with the module: in_features fixed at 108.
    B, N, K, D = 2, 8, 108, 32

    key = jax.random.PRNGKey(0)
    k_x, k_w, k_b, k_p = jax.random.split(key, 4)

    patch = jax.random.normal(k_x, (B, N, K), dtype=jnp.float32)
    weight = jax.random.normal(k_w, (D, K), dtype=jnp.float32) * 0.05   # Linear.weight
    bias = jax.random.normal(k_b, (D,), dtype=jnp.float32) * 0.05       # Linear.bias
    pos_emb = jax.random.normal(k_p, (1, N, D), dtype=jnp.float32)      # position_embedding

    def ref_fn(p):
        return jnp.einsum("bnk,dk->bnd", p, weight) + bias + pos_emb

    # 1) Pallas kernel, single full-extent tile.
    out = jax.block_until_ready(
        patch_encoder(patch, weight, bias, pos_emb, force_pallas=True))
    assert out.shape == (B, N, D)
    assert jnp.allclose(out, ref_fn(patch), atol=1e-4, rtol=1e-4)

    # 2) Pallas kernel, multi-tile grid with a ragged last tile (forced small tm).
    patch2 = jax.random.normal(jax.random.PRNGKey(1), (3, N, K), dtype=jnp.float32)
    out2 = jax.block_until_ready(
        patch_encoder(patch2, weight, bias, pos_emb, row_tile_cap=16,
                      force_pallas=True))
    assert jnp.allclose(out2, ref_fn(patch2), atol=1e-4, rtol=1e-4)

    # 3) Small-M XLA fallback path (default dispatch).
    out3 = jax.block_until_ready(patch_encoder(patch, weight, bias, pos_emb))
    assert jnp.allclose(out3, ref_fn(patch), atol=1e-4, rtol=1e-4)

    print("KERNEL_OK")
</pallas_src>

<mosaic_0001>
module attributes {stable_mosaic.version = 11 : i64} {
  func.func @_patch_encoder_kernel(%arg0: i32, %arg1: memref<16x108xf32, #tpu.memory_space<vmem>>, %arg2: memref<32x108xf32, #tpu.memory_space<vmem>>, %arg3: memref<8x32xf32, #tpu.memory_space<vmem>>, %arg4: memref<16x32xf32, #tpu.memory_space<vmem>>) attributes {dimension_semantics = [#tpu.dimension_semantics<parallel>], iteration_bounds = array<i64: 1>, scalar_prefetch = 0 : i64, scratch_operands = 0 : i64, tpu.core_type = #tpu.core_type<tc>, window_params = [{transform_indices = @transform_0, window_bounds = array<i64: 16, 108>}, {pipeline_mode = #tpu.pipeline_mode<synchronous>, transform_indices = @transform_1, window_bounds = array<i64: 32, 108>}, {pipeline_mode = #tpu.pipeline_mode<synchronous>, transform_indices = @transform_2, window_bounds = array<i64: 8, 32>}, {transform_indices = @transform_3, window_bounds = array<i64: 16, 32>}]} {
    %c0 = arith.constant 0 : index
    %c0_0 = arith.constant 0 : index
    %0 = vector.load %arg1[%c0, %c0_0] : memref<16x108xf32, #tpu.memory_space<vmem>>, vector<16x108xf32>
    %c0_1 = arith.constant 0 : index
    %c0_2 = arith.constant 0 : index
    %1 = vector.load %arg2[%c0_1, %c0_2] : memref<32x108xf32, #tpu.memory_space<vmem>>, vector<32x108xf32>
    %cst = arith.constant dense<0.000000e+00> : vector<16x32xf32>
    %2 = tpu.matmul %0, %1, %cst {dimension_numbers = #tpu.dot_dimension_numbers<[1], [1], [0], [0], [0, 0, 1, 0], [], []>} : vector<16x108xf32>, vector<32x108xf32>, vector<16x32xf32> -> vector<16x32xf32>
    %c0_3 = arith.constant 0 : index
    %c0_4 = arith.constant 0 : index
    %3 = vector.load %arg3[%c0_3, %c0_4] : memref<8x32xf32, #tpu.memory_space<vmem>>, vector<8x32xf32>
    %4 = tpu.concatenate %3, %3 in 0 : vector<8x32xf32>, vector<8x32xf32> -> vector<16x32xf32>
    %5 = arith.addf %2, %4 : vector<16x32xf32>
    %c0_5 = arith.constant 0 : index
    %c0_6 = arith.constant 0 : index
    %6 = vector.load %arg4[%c0_5, %c0_6] : memref<16x32xf32, #tpu.memory_space<vmem>>, vector<16x32xf32>
    tpu.vector_store %arg4[%c0_5, %c0_6], %5 {strides = array<i32>} : memref<16x32xf32, #tpu.memory_space<vmem>>, vector<16x32xf32>,
    return
  }
  func.func @transform_0(%arg0: i32) -> (i32, i32) {
    %c0_i32 = arith.constant 0 : i32
    %c0_i32_0 = arith.constant 0 : i32
    return %arg0, %c0_i32 : i32, i32
  }
  func.func @transform_1(%arg0: i32) -> (i32, i32) {
    %c0_i32 = arith.constant 0 : i32
    %c0_i32_0 = arith.constant 0 : i32
    %c0_i32_1 = arith.constant 0 : i32
    return %c0_i32, %c0_i32_0 : i32, i32
  }
  func.func @transform_2(%arg0: i32) -> (i32, i32) {
    %c0_i32 = arith.constant 0 : i32
    %c0_i32_0 = arith.constant 0 : i32
    %c0_i32_1 = arith.constant 0 : i32
    return %c0_i32, %c0_i32_0 : i32, i32
  }
  func.func @transform_3(%arg0: i32) -> (i32, i32) {
    %c0_i32 = arith.constant 0 : i32
    %c0_i32_0 = arith.constant 0 : i32
    return %arg0, %c0_i32 : i32, i32
  }
}

</mosaic_0001>

<bundles_post_ra>
// kernel: tpu_custom_call.1
= control target key start
LH: loop header
LB: loop body
LE: loop exit
PB: predicated region body
PF: predicated region fallthrough
CT: control target
= control target key end

     0   :  { %8 = vsyncpa [#allocation3], 0  ;;  %s401_s0 = inlined_call_operand.hbm [shape: f32[16,108], index: 0, kind: input, shape index: {}]   ;;  %s402_s1 = inlined_call_operand.hbm [shape: f32[32,108], index: 1, kind: input, shape index: {}]   ;;  %s403_s2 = inlined_call_operand.hbm [shape: f32[8,32], index: 2, kind: input, shape index: {}]   ;;  %s404_s3 = inlined_call_operand.hbm [shape: f32[16,32], index: 3, kind: output, shape index: {}]  }
   0x1   :  { %9 = vsyncpa [#allocation6], 0 }
   0x2   :  { %10 = vsyncpa [#allocation4], 0  ;;  %s311_s12 = smov [#allocation5]   ;;  %s312_s14 = smov [#allocation2]  }
   0x3   :  { %s28_s13 = sshll.u32 %s311_s12, 4  ;;  %s16_s15 = sshll.u32 %s312_s14, 4  ;;  %s29_s13 = int_to_ptr.vmem [resolvable:$true] %s28_s13  ;;  %s337_s15 = int_to_ptr.vmem [resolvable:$true] %s16_s15 }
   0x4   :  { %s217_s18 = scalar_lea.hbm %s402_s1, 512 }
   0x5   :  { %p218_p0 = scmp.ne.s32.totalorder %s402_s1, %s217_s18  ;;  %p221_p1 = scmp.lt.u32.totalorder %s217_s18, %s402_s1 }
   0x7   :  { %p223_p2 = pnand %p221_p1, %p218_p0 }
   0x9   :  { %226 = shalt.err (!%p223_p2)
}
   0xa   :  { %s227_s23 = scalar_lea.vmem %s29_s13, 512  ;;  %p232_p4 = scmp.lt.s32.totalorder %s29_s13, %s29_s13 }
   0xb   :  { %p228_p3 = scmp.ne.s32.totalorder %s29_s13, %s227_s23  ;;  %p233_p5 = scmp.lt.s32.totalorder %s227_s23, %s227_s23 }
   0xd   :  { %p234_p6 = por %p233_p5, %p232_p4 }
   0xf   :  { %p235_p7 = pnand %p234_p6, %p228_p3 }
  0x11   :  { %238 = shalt.err (!%p235_p7)
}
  0x12   :  { %s313_s24 = smov 128   ;;  %s314_s25 = smov 8  }
  0x13   :  { %34 = dma.hbm_to_vmem [thread:$0]  %s402_s1, 512, %s29_s13, [#allocation6], %s313_s24, %s313_s24, %s314_s25  }
  0x14   :  { %s239_s30 = scalar_lea.hbm %s401_s0, 256 }
  0x15   :  { %p240_p8 = scmp.ne.s32.totalorder %s401_s0, %s239_s30  ;;  %p243_p9 = scmp.lt.u32.totalorder %s239_s30, %s401_s0 }
  0x17   :  { %p245_p10 = pnand %p243_p9, %p240_p8 }
  0x19   :  { %248 = shalt.err (!%p245_p10)
}
  0x1a   :  { %s249_s8 = scalar_lea.vmem %s337_s15, 256  ;;  %p254_p12 = scmp.lt.s32.totalorder %s337_s15, %s337_s15 }
  0x1b   :  { %p250_p11 = scmp.ne.s32.totalorder %s337_s15, %s249_s8  ;;  %p255_p13 = scmp.lt.s32.totalorder %s249_s8, %s249_s8 }
  0x1d   :  { %p256_p0 = por %p255_p13, %p254_p12 }
  0x1f   :  { %p257_p1 = pnand %p256_p0, %p250_p11 }
  0x21   :  { %260 = shalt.err (!%p257_p1)
}
  0x22   :  { %22 = dma.hbm_to_vmem [thread:$0]  %s401_s0, 256, %s337_s15, [#allocation3], %s313_s24, %s313_s24, %s314_s25  }
  0x23   :  { %s315_s10 = smov [#allocation7]   ;;  %s261_s14 = scalar_lea.hbm %s403_s2, 128 }
  0x24   :  { %s41_s11 = sshll.u32 %s315_s10, 4  ;;  %p262_p2 = scmp.ne.s32.totalorder %s403_s2, %s261_s14  ;;  %s42_s11 = int_to_ptr.vmem [resolvable:$true] %s41_s11 }
  0x25   :  { %p265_p3 = scmp.lt.u32.totalorder %s261_s14, %s403_s2 }
  0x27   :  { %p267_p4 = pnand %p265_p3, %p262_p2 }
  0x29   :  { %270 = shalt.err (!%p267_p4)
}
  0x2a   :  { %s271_s20 = scalar_lea.vmem %s42_s11, 128  ;;  %p276_p6 = scmp.lt.s32.totalorder %s42_s11, %s42_s11 }
  0x2b   :  { %p272_p5 = scmp.ne.s32.totalorder %s42_s11, %s271_s20  ;;  %p277_p7 = scmp.lt.s32.totalorder %s271_s20, %s271_s20 }
  0x2d   :  { %p278_p8 = por %p277_p7, %p276_p6 }
  0x2f   :  { %p279_p9 = pnand %p278_p8, %p272_p5 }
  0x31   :  { %282 = shalt.err (!%p279_p9)
}
  0x32   :  { %44 = dma.hbm_to_vmem [thread:$0]  %s403_s2, 128, %s42_s11, [#allocation6]  }
  0x33   :  { %305 = dma.done.wait [#allocation3], 256  }
  0x34   :  { %306 = vsyncadd [#allocation3], 4294967040 }
  0x35   :  { %307 = dma.done.wait [#allocation6], 640  }
  0x36   :  { %308 = vsyncadd [#allocation6], 4294966656  ;;  %vm61_vm0 = vcmask 883712   ;;  %v56_v0 = vld [vmem:[#allocation5] sm:$0xff]  ;;  %v57_v1 = vld [vmem:[#allocation5 + $0x8] sm:$0xff]  ;;  %s316_s2 = smov [#allocation8]  }
  0x37   :  { %vm200_vm1 = vmpackc.low %vm61_vm0, %vm61_vm0  ;;  %v58_v2 = vld [vmem:[#allocation5 + $0x10] sm:$0xff]  ;;  %v199_v3 = vpack.c.bf16 %v57_v1, %v56_v0  ;;  %v59_v4 = vld [vmem:[#allocation5 + $0x18] sm:$0xff]  ;;  %s163_s21 = sshll.u32 %s316_s2, 4  ;;  %vm155_vm2 = vcmask 261120   ;;  %s164_s21 = int_to_ptr.vmem [resolvable:$true] %s163_s21 }
  0x38   :  { %v54_v5 = vld [vmem:[#allocation2] sm:$0xff]  ;;  %v205_v6 = vpack.c.bf16 %v59_v4, %v58_v2  ;;  %v55_v7 = vld [vmem:[#allocation2 + $0x8] sm:$0xff]  ;;  %v60_v8 = vld [vmem:[#allocation7] sm:$0xff]  ;;  %s283_s22 = scalar_lea.vmem %s164_s21, 256  ;;  %p288_p11 = scmp.lt.s32.totalorder %s164_s21, %s164_s21 }
  0x39   :  { %196 = vmatprep.mubr.msk.f32.mxu0 %vm61_vm0, %v54_v5  ;;  %201 = vmatprep.subr.msk.bf16.mxu0 %vm200_vm1, %v199_v3  ;;  %p284_p10 = scmp.ne.s32.totalorder %s164_s21, %s283_s22  ;;  %p289_p12 = scmp.lt.s32.totalorder %s283_s22, %s283_s22 }
  0x3a   :  { %204 = vmatpush3.bf16.xpose.msk.msra.mxu0 %vm200_vm1, %v199_v3 }
  0x3b   :  { %207 = vmatprep.subr.msk.bf16.mxu0 %vm200_vm1, %v205_v6  ;;  %p290_p13 = por %p289_p12, %p288_p11 }
  0x3d   :  { %p291_p0 = pnand %p290_p13, %p284_p10 }
  0x42   :  { %210 = vmatpush3.bf16.xpose.msk.msra.mxu0 %vm200_vm1, %v205_v6 }
  0x49   :  { %197 = vmatmul.mubr.msk.f32.vlgmr.msra.gmra.mrb[0].mxu0 %vm61_vm0, %v55_v7 }
 0x11c   :  { %v198_v9 = vpop.f32.mrb[0].mxu0 }
 0x11d   :  { %v152_v10 = vadd.f32 %v198_v9, %v60_v8  ;;  %v146_v11 = vpop.f32.mrb[1].mxu0 }
 0x11e   :  { %v147_v12 = vadd.f32 %v146_v11, %v60_v8 }
 0x11f   :  { %157 = vst.msk [vmem:[#allocation8 + $0x8] sm:$0xff] %vm155_vm2, %v152_v10 }
 0x120   :  { %156 = vst.msk [vmem:[#allocation8] sm:$0xff] %vm155_vm2, %v147_v12 }
 0x121   :  { %294 = shalt.err (!%p291_p0)
}
 0x122   :  { %s295_s27 = scalar_lea.hbm %s404_s3, 256 }
 0x123   :  { %p296_p1 = scmp.ne.s32.totalorder %s404_s3, %s295_s27  ;;  %p299_p2 = scmp.lt.u32.totalorder %s295_s27, %s404_s3 }
 0x125   :  { %p301_p3 = pnand %p299_p2, %p296_p1 }
 0x127   :  { %304 = shalt.err (!%p301_p3)
}
 0x128   :  { %169 = dma.vmem_to_hbm [thread:$0]  %s164_s21, 256, %s404_s3, [#allocation4], %s313_s24, %s313_s24, %s314_s25  }
 0x129   :  { %309 = dma.done.wait [#allocation4], 256  }
 0x12a   :  { %310 = vsyncadd [#allocation4], 4294967040 }
 0x12b   :  { %173 = vsyncpa [#allocation3], 1 }
 0x12c   :  { %174 = vsyncpa [#allocation6], 1 }
 0x12d   :  { %175 = vsyncpa [#allocation4], 1 }

</bundles_post_ra>
